<compile_context>
chip_gen: v5e
topology: v5e:2x2
jax: 0.10.0
libtpu: 0.0.40
codegen_flags: <defaults>
</compile_context>

<pallas_src>
import jax
import jax.numpy as jnp
from jax.experimental import pallas as pl
from jax.experimental.pallas import tpu as pltpu


def _conv1x1_kernel(w_ref, b_ref, x_ref, xi_ref, o_ref):
    # w_ref: (8,) f32 SMEM, row-major (oc, ic) of the (2, 4) 1x1-conv weight.
    # b_ref: (2,)  f32 SMEM.
    # x_ref, xi_ref: (1, 2, TS, L) VMEM.   o_ref: (1, 2, TS, L) VMEM.
    x0 = x_ref[0, 0].astype(jnp.float32)   # (TS, L) dense tiles
    x1 = x_ref[0, 1].astype(jnp.float32)
    y0 = xi_ref[0, 0].astype(jnp.float32)
    y1 = xi_ref[0, 1].astype(jnp.float32)

    # Hoist all scalar (SMEM) reads / splats out of the compute chain.
    w00, w01, w02, w03 = w_ref[0], w_ref[1], w_ref[2], w_ref[3]
    w10, w11, w12, w13 = w_ref[4], w_ref[5], w_ref[6], w_ref[7]
    b0, b1 = b_ref[0], b_ref[1]

    # Store each output channel directly (no concat temporary).
    o_ref[0, 0] = (w00 * x0 + w01 * x1 + w02 * y0 + w03 * y1 + b0).astype(o_ref.dtype)
    o_ref[0, 1] = (w10 * x0 + w11 * x1 + w12 * y0 + w13 * y1 + b1).astype(o_ref.dtype)


def preprocess_forward(x, x_init, weight, bias):
    """x, x_init: (B, 2, H, W) NCHW; weight: (2, 4) or (2, 4, 1, 1); bias: (2,)."""
    B, C, H, W = x.shape
    assert C == 2 and x_init.shape == x.shape
    weight2d = weight.reshape(weight.shape[0], -1)
    OC, IC = weight2d.shape
    assert OC == 2 and IC == 2 * C
    N = H * W

    # ---- tile geometry -------------------------------------------------
    LANE = 128
    # Lane width: 512 lanes when there are enough pixels, else pad N up to a
    # multiple of 128 and use a single row of that width.
    if N >= 512:
        L = 512
    else:
        L = ((N + LANE - 1) // LANE) * LANE
    rows_needed = -(-N // L)                 # ceil(N / L)
    if rows_needed <= 128:
        TS = rows_needed                     # full-extent block (no mod-8 need)
        R = rows_needed
    else:
        TS = 128                             # multiple of 8; ~512 KiB / operand
        R = -(-rows_needed // TS) * TS       # pad rows so the grid divides evenly
    N_pad = R * L

    # ---- layout plumbing (free reshapes of contiguous NCHW + optional pad) --
    x3 = x.reshape(B, C, N)
    xi3 = x_init.reshape(B, C, N)
    if N_pad != N:
        pad = N_pad - N
        x3 = jnp.pad(x3, ((0, 0), (0, 0), (0, pad)))
        xi3 = jnp.pad(xi3, ((0, 0), (0, 0), (0, pad)))
    x4 = x3.reshape(B, C, R, L)
    xi4 = xi3.reshape(B, C, R, L)

    grid = (B, R // TS)

    out4 = pl.pallas_call(
        _conv1x1_kernel,
        out_shape=jax.ShapeDtypeStruct((B, OC, R, L), x.dtype),
        grid=grid,
        in_specs=[
            pl.BlockSpec(memory_space=pltpu.MemorySpace.SMEM),        # weight (8,)
            pl.BlockSpec(memory_space=pltpu.MemorySpace.SMEM),        # bias (2,)
            pl.BlockSpec((1, C, TS, L), lambda b, r: (b, 0, r, 0)),   # x
            pl.BlockSpec((1, C, TS, L), lambda b, r: (b, 0, r, 0)),   # x_init
        ],
        out_specs=pl.BlockSpec((1, OC, TS, L), lambda b, r: (b, 0, r, 0)),
        compiler_params=pltpu.CompilerParams(
            dimension_semantics=("parallel", "parallel")),
    )(weight2d.reshape(-1).astype(jnp.float32),
      bias.astype(jnp.float32),
      x4, xi4)

    # Free reshape + slice back to NCHW.
    out3 = out4.reshape(B, OC, N_pad)
    if N_pad != N:
        out3 = out3[:, :, :N]
    return out3.reshape(B, OC, H, W)


if __name__ == "__main__":
    key = jax.random.PRNGKey(0)
    k_x, k_xi, k_w, k_b = jax.random.split(key, 4)

    # Small shapes consistent with the module: cat along channels gives 4.
    B, C_half, H, W = 2, 2, 16, 16
    x = jax.random.normal(k_x, (B, C_half, H, W), dtype=jnp.float32)
    x_init = jax.random.normal(k_xi, (B, C_half, H, W), dtype=jnp.float32)

    # Conv2d(4, 2, kernel_size=1) parameters: weight (2, 4, 1, 1) -> (2, 4), bias (2,)
    weight = jax.random.normal(k_w, (2, 4), dtype=jnp.float32) * 0.1
    bias = jax.random.normal(k_b, (2,), dtype=jnp.float32) * 0.1

    out = preprocess_forward(x, x_init, weight, bias)
    out = jax.block_until_ready(out)

    # Reference check in plain JAX (same semantics as the PyTorch 1x1 conv).
    x_cat = jnp.concatenate((x, x_init), axis=1)
    ref = jnp.einsum("oc,bchw->bohw", weight, x_cat) + bias[None, :, None, None]
    assert out.shape == (B, 2, H, W)
    assert jnp.allclose(out, ref, atol=1e-5, rtol=1e-5)

    print("KERNEL_OK")
</pallas_src>

<mosaic_0001>
module attributes {stable_mosaic.version = 11 : i64} {
  func.func @_conv1x1_kernel(%arg0: i32, %arg1: i32, %arg2: memref<8xf32, #tpu.memory_space<smem>>, %arg3: memref<2xf32, #tpu.memory_space<smem>>, %arg4: memref<1x2x1x256xf32, #tpu.memory_space<vmem>>, %arg5: memref<1x2x1x256xf32, #tpu.memory_space<vmem>>, %arg6: memref<1x2x1x256xf32, #tpu.memory_space<vmem>>) attributes {dimension_semantics = [#tpu.dimension_semantics<parallel>, #tpu.dimension_semantics<parallel>], iteration_bounds = array<i64: 2, 1>, scalar_prefetch = 0 : i64, scratch_operands = 0 : i64, tpu.core_type = #tpu.core_type<tc>, window_params = [{transform_indices = @transform_0, window_bounds = array<i64: 8>}, {transform_indices = @transform_1, window_bounds = array<i64: 2>}, {transform_indices = @transform_2, window_bounds = array<i64: 1, 2, 1, 256>}, {transform_indices = @transform_3, window_bounds = array<i64: 1, 2, 1, 256>}, {transform_indices = @transform_4, window_bounds = array<i64: 1, 2, 1, 256>}]} {
    %c0 = arith.constant 0 : index
    %c0_0 = arith.constant 0 : index
    %c0_1 = arith.constant 0 : index
    %c0_2 = arith.constant 0 : index
    %0 = vector.load %arg4[%c0, %c0_0, %c0_1, %c0_2] : memref<1x2x1x256xf32, #tpu.memory_space<vmem>>, vector<1x1x1x256xf32>
    %1 = vector.shape_cast %0 : vector<1x1x1x256xf32> to vector<1x256xf32>
    %c0_3 = arith.constant 0 : index
    %c1 = arith.constant 1 : index
    %c0_4 = arith.constant 0 : index
    %c0_5 = arith.constant 0 : index
    %2 = vector.load %arg4[%c0_3, %c1, %c0_4, %c0_5] : memref<1x2x1x256xf32, #tpu.memory_space<vmem>>, vector<1x1x1x256xf32>
    %3 = vector.shape_cast %2 : vector<1x1x1x256xf32> to vector<1x256xf32>
    %c0_6 = arith.constant 0 : index
    %c0_7 = arith.constant 0 : index
    %c0_8 = arith.constant 0 : index
    %c0_9 = arith.constant 0 : index
    %4 = vector.load %arg5[%c0_6, %c0_7, %c0_8, %c0_9] : memref<1x2x1x256xf32, #tpu.memory_space<vmem>>, vector<1x1x1x256xf32>
    %5 = vector.shape_cast %4 : vector<1x1x1x256xf32> to vector<1x256xf32>
    %c0_10 = arith.constant 0 : index
    %c1_11 = arith.constant 1 : index
    %c0_12 = arith.constant 0 : index
    %c0_13 = arith.constant 0 : index
    %6 = vector.load %arg5[%c0_10, %c1_11, %c0_12, %c0_13] : memref<1x2x1x256xf32, #tpu.memory_space<vmem>>, vector<1x1x1x256xf32>
    %7 = vector.shape_cast %6 : vector<1x1x1x256xf32> to vector<1x256xf32>
    %c0_14 = arith.constant 0 : index
    %8 = memref.load %arg2[%c0_14] : memref<8xf32, #tpu.memory_space<smem>>
    %c1_15 = arith.constant 1 : index
    %9 = memref.load %arg2[%c1_15] : memref<8xf32, #tpu.memory_space<smem>>
    %c2 = arith.constant 2 : index
    %10 = memref.load %arg2[%c2] : memref<8xf32, #tpu.memory_space<smem>>
    %c3 = arith.constant 3 : index
    %11 = memref.load %arg2[%c3] : memref<8xf32, #tpu.memory_space<smem>>
    %c4 = arith.constant 4 : index
    %12 = memref.load %arg2[%c4] : memref<8xf32, #tpu.memory_space<smem>>
    %c5 = arith.constant 5 : index
    %13 = memref.load %arg2[%c5] : memref<8xf32, #tpu.memory_space<smem>>
    %c6 = arith.constant 6 : index
    %14 = memref.load %arg2[%c6] : memref<8xf32, #tpu.memory_space<smem>>
    %c7 = arith.constant 7 : index
    %15 = memref.load %arg2[%c7] : memref<8xf32, #tpu.memory_space<smem>>
    %c0_16 = arith.constant 0 : index
    %16 = memref.load %arg3[%c0_16] : memref<2xf32, #tpu.memory_space<smem>>
    %c1_17 = arith.constant 1 : index
    %17 = memref.load %arg3[%c1_17] : memref<2xf32, #tpu.memory_space<smem>>
    %18 = vector.broadcast %8 : f32 to vector<1x256xf32>
    %19 = arith.mulf %18, %1 : vector<1x256xf32>
    %20 = vector.broadcast %9 : f32 to vector<1x256xf32>
    %21 = arith.mulf %20, %3 : vector<1x256xf32>
    %22 = arith.addf %19, %21 : vector<1x256xf32>
    %23 = vector.broadcast %10 : f32 to vector<1x256xf32>
    %24 = arith.mulf %23, %5 : vector<1x256xf32>
    %25 = arith.addf %22, %24 : vector<1x256xf32>
    %26 = vector.broadcast %11 : f32 to vector<1x256xf32>
    %27 = arith.mulf %26, %7 : vector<1x256xf32>
    %28 = arith.addf %25, %27 : vector<1x256xf32>
    %29 = vector.broadcast %16 : f32 to vector<1x256xf32>
    %30 = arith.addf %28, %29 : vector<1x256xf32>
    %c0_18 = arith.constant 0 : index
    %c0_19 = arith.constant 0 : index
    %c0_20 = arith.constant 0 : index
    %c0_21 = arith.constant 0 : index
    %31 = vector.load %arg6[%c0_18, %c0_19, %c0_20, %c0_21] : memref<1x2x1x256xf32, #tpu.memory_space<vmem>>, vector<1x1x1x256xf32>
    %32 = vector.shape_cast %31 : vector<1x1x1x256xf32> to vector<1x256xf32>
    %33 = vector.shape_cast %30 : vector<1x256xf32> to vector<1x1x1x256xf32>
    tpu.vector_store %arg6[%c0_18, %c0_19, %c0_20, %c0_21], %33 {strides = array<i32>} : memref<1x2x1x256xf32, #tpu.memory_space<vmem>>, vector<1x1x1x256xf32>,
    %34 = vector.broadcast %12 : f32 to vector<1x256xf32>
    %35 = arith.mulf %34, %1 : vector<1x256xf32>
    %36 = vector.broadcast %13 : f32 to vector<1x256xf32>
    %37 = arith.mulf %36, %3 : vector<1x256xf32>
    %38 = arith.addf %35, %37 : vector<1x256xf32>
    %39 = vector.broadcast %14 : f32 to vector<1x256xf32>
    %40 = arith.mulf %39, %5 : vector<1x256xf32>
    %41 = arith.addf %38, %40 : vector<1x256xf32>
    %42 = vector.broadcast %15 : f32 to vector<1x256xf32>
    %43 = arith.mulf %42, %7 : vector<1x256xf32>
    %44 = arith.addf %41, %43 : vector<1x256xf32>
    %45 = vector.broadcast %17 : f32 to vector<1x256xf32>
    %46 = arith.addf %44, %45 : vector<1x256xf32>
    %c0_22 = arith.constant 0 : index
    %c1_23 = arith.constant 1 : index
    %c0_24 = arith.constant 0 : index
    %c0_25 = arith.constant 0 : index
    %47 = vector.load %arg6[%c0_22, %c1_23, %c0_24, %c0_25] : memref<1x2x1x256xf32, #tpu.memory_space<vmem>>, vector<1x1x1x256xf32>
    %48 = vector.shape_cast %47 : vector<1x1x1x256xf32> to vector<1x256xf32>
    %49 = vector.shape_cast %46 : vector<1x256xf32> to vector<1x1x1x256xf32>
    tpu.vector_store %arg6[%c0_22, %c1_23, %c0_24, %c0_25], %49 {strides = array<i32>} : memref<1x2x1x256xf32, #tpu.memory_space<vmem>>, vector<1x1x1x256xf32>,
    return
  }
  func.func @transform_0(%arg0: i32, %arg1: i32) -> i32 {
    %c0_i32 = arith.constant 0 : i32
    %c0_i32_0 = arith.constant 0 : i32
    return %c0_i32 : i32
  }
  func.func @transform_1(%arg0: i32, %arg1: i32) -> i32 {
    %c0_i32 = arith.constant 0 : i32
    %c0_i32_0 = arith.constant 0 : i32
    return %c0_i32 : i32
  }
  func.func @transform_2(%arg0: i32, %arg1: i32) -> (i32, i32, i32, i32) {
    %c0_i32 = arith.constant 0 : i32
    %c0_i32_0 = arith.constant 0 : i32
    %c0_i32_1 = arith.constant 0 : i32
    return %arg0, %c0_i32, %arg1, %c0_i32_0 : i32, i32, i32, i32
  }
  func.func @transform_3(%arg0: i32, %arg1: i32) -> (i32, i32, i32, i32) {
    %c0_i32 = arith.constant 0 : i32
    %c0_i32_0 = arith.constant 0 : i32
    %c0_i32_1 = arith.constant 0 : i32
    return %arg0, %c0_i32, %arg1, %c0_i32_0 : i32, i32, i32, i32
  }
  func.func @transform_4(%arg0: i32, %arg1: i32) -> (i32, i32, i32, i32) {
    %c0_i32 = arith.constant 0 : i32
    %c0_i32_0 = arith.constant 0 : i32
    %c0_i32_1 = arith.constant 0 : i32
    return %arg0, %c0_i32, %arg1, %c0_i32_0 : i32, i32, i32, i32
  }
}

</mosaic_0001>

<bundles_post_ra>
// kernel: tpu_custom_call.1
= control target key start
LH: loop header
LB: loop body
LE: loop exit
PB: predicated region body
PF: predicated region fallthrough
CT: control target
= control target key end

     0   :  { %s1026_s0 = inlined_call_operand.hbm [shape: f32[8], index: 0, kind: input, shape index: {}]   ;;  %s1027_s1 = inlined_call_operand.hbm [shape: f32[2], index: 1, kind: input, shape index: {}]   ;;  %s1028_s2 = inlined_call_operand.hbm [shape: f32[2,2,1,256], index: 2, kind: input, shape index: {}]   ;;  %s1029_s3 = inlined_call_operand.hbm [shape: f32[2,2,1,256], index: 3, kind: input, shape index: {}]   ;;  %s1030_s4 = inlined_call_operand.hbm [shape: f32[2,2,1,256], index: 4, kind: output, shape index: {}]  }
   0x1   :  { %1033 = sst [smem:[#allocation19_spill]] %s1026_s0 }
   0x2   :  { %1034 = sst [smem:[#allocation20_spill]] %s1027_s1 }
   0x3   :  { %1035 = sst [smem:[#allocation21_spill]] %s1028_s2 }
   0x4   :  { %9 = vsyncpa [#allocation5], 0 }
   0x5   :  { %10 = vsyncpa [#allocation7], 0 }
   0x6   :  { %11 = vsyncpa [#allocation3], 0 }
   0x7   :  { %13 = vsyncpa [#allocation3 + $0x1], 0 }
   0x8   :  { %14 = vsyncpa [#allocation10], 0 }
   0x9   :  { %16 = vsyncpa [#allocation10 + $0x1], 0 }
   0xa   :  { %17 = vsyncpa [#allocation4], 0 }
   0xb   :  { %19 = vsyncpa [#allocation4 + $0x1], 0  ;;  %s845_s15 = smov 0   ;;  %s847_s16 = smov 0  }
   0xc   :  { %s849_s17 = smov 0   ;;  %s851_s18 = smov 0  }
   0xd   :  { %s853_s19 = smov 0   ;;  %s855_s20 = smov 0  }
   0xe LB: > { %1036 = sst [smem:[#allocation17_spill]] %s808_s19  ;;  %s505_s21 = sadd.s32 4294967295, %s812_s20   ;;  %s812_s20 = sphi %s855_s20, %s25_s20   ;;  %s808_s19 = sphi %s853_s19, %s1049_s19   ;;  %s804_s18 = sphi %s851_s18, %s1048_s18   ;;  %s800_s17 = sphi %s849_s17, %s1052_s17   ;;  %s796_s16 = sphi %s847_s16, %s1051_s16   ;;  %s792_s15 = sphi %s845_s15, %s1050_s15  }
   0xf   : > { %s506_s22 = sadd.s32 4294967294, %s812_s20   ;;  %s88_s23 = sadd.s32 1, %s800_s17 }
  0x10   : > { %p95_p0 = scmp.ne.s32.totalorder %s800_s17, %s796_s16  ;;  %p96_p1 = scmp.eq.s32.totalorder %s812_s20, 0 }
  0x11   : > { %p101_p2 = scmp.ne.s32.totalorder %s796_s16, %s792_s15  ;;  %p883_p3 = scmp.eq.s32.totalorder %s505_s21, 0 }
  0x12   : > { %p155_p4 = scmp.eq.s32.totalorder %s505_s21, 1  ;;  %p887_p5 = por %p96_p1, %p95_p0 }
  0x13   : > { %p161_p6 = scmp.eq.s32.totalorder %s506_s22, 1  ;;  %p893_p7 = por %p883_p3, %p101_p2 }
  0x14   : > { %p897_p8 = por %p155_p4, %p95_p0  ;;  %p507_p10 = scmp.ge.s32.totalorder %s812_s20, 1 }
  0x15   : > { %p901_p9 = por %p161_p6, %p101_p2  ;;  %p168_p11 = scmp.lt.s32.totalorder %s812_s20, 3 }
  0x16   : > { %s1042_s0 = sld [smem:[#allocation19_spill]]  ;;  %p510_p13 = scmp.ge.s32.totalorder %s812_s20, 2 }
  0x17   : > { %p910_p12 = pnand %p507_p10, %p168_p11  ;;  %p570_p0 = scmp.lt.s32.totalorder %s812_s20, 2 }
  0x18   : > { %s1044_s1 = sld [smem:[#allocation20_spill]]  ;;  %s814_s11 = smov [#allocation2]  }
  0x19   : > { %p550_p1 = pneg %p910_p12  ;;  %p923_p2 = pnand %p570_p0, %p887_p5 }
  0x1a   : > { %s815_s12 = smov [#allocation6]   ;;  %s37_s13 = sadd.s32 1, %s808_s19 }
  0x1b   : > { %p551_p4 = pnand %p550_p1, %p883_p3  ;;  %s931_s14 = sand.u32 1, %s800_s17  }
  0x1c   : > { %s180_s5 = sshll.u32 %s1042_s0, 4  ;;  %p39_p6 = scmp.ge.s32.totalorder %s37_s13, 2  ;;  %s181_s5 = int_to_ptr.hbm [resolvable:$true] %s180_s5 }
  0x1d   : > { %553 = dma.hbm_to_smem (!%p551_p4), %s181_s5, 16, %s814_s11, [#allocation5]  }
  0x1e   : > { %s190_s9 = sshll.u32 %s1044_s1, 4  ;;  %s511_s21 = sshll.u32 %s931_s14, 2  ;;  %s191_s9 = int_to_ptr.hbm [resolvable:$true] %s190_s9 }
  0x1f   : > { %556 = dma.hbm_to_smem (!%p551_p4), %s191_s9, 16, %s815_s12, [#allocation7]  }
  0x20   : > { %s512_s22 = sshll.u32 %s808_s19, 2  ;;  %s1054_s13 = smov (%p39_p6, %s37_s13), 0 }
  0x21   : > { %1046 = sst [smem:[#allocation18_spill]] %s1054_s13  ;;  %s83_s5 = ssub.s32 %s808_s19, %s1054_s13 }
  0x22   : > { %s1047_s2 = sld [smem:[#allocation21_spill]]  ;;  %p86_p5 = scmp.eq.s32.totalorder %s83_s5, 0 }
  0x23   : > { %s205_s8 = scalar_lea.vmem [#allocation8], %s511_s21  ;;  %s202_s12 = scalar_lea.sflag [#allocation3], %s931_s14 }
  0x24   : > { %s214_s9 = sshll.u32 %s205_s8, 4  ;;  %s816_s0 = smov 32   ;;  %s215_s9 = int_to_ptr.vmem [resolvable:$true] %s214_s9 }
  0x25   : > { %s945_s11 = scalar_select %p86_p5, %s800_s17, %s88_s23  }
  0x26   : > { %s817_s1 = smov 2   ;;  %s225_s19 = scalar_lea.sflag [#allocation10], %s931_s14 }
  0x28   : > { %s211_s30 = scalar_lea.hbm %s1047_s2, %s512_s22  ;;  %s234_s2 = scalar_lea.hbm %s1029_s3, %s512_s22 }
  0x29   : > { %s212_s7 = sshll.u32 %s211_s30, 4  ;;  %s228_s30 = scalar_lea.vmem [#allocation9], %s511_s21  ;;  %s213_s7 = int_to_ptr.hbm [resolvable:$true] %s212_s7 }
  0x2a   : > { %560 = dma.hbm_to_vmem [thread:$0]  (!%p923_p2), %s213_s7, 64, %s215_s9, %s202_s12, %s816_s0, %s816_s0, %s817_s1  }
  0x2b   : > { %s237_s5 = sshll.u32 %s228_s30, 4  ;;  %s235_s13 = sshll.u32 %s234_s2, 4  ;;  %s238_s5 = int_to_ptr.vmem [resolvable:$true] %s237_s5  ;;  %s236_s13 = int_to_ptr.hbm [resolvable:$true] %s235_s13 }
  0x2c   : > { %563 = dma.hbm_to_vmem [thread:$0]  (!%p923_p2), %s236_s13, 64, %s238_s5, %s225_s19, %s816_s0, %s816_s0, %s817_s1  }
  0x2d   : > { %249 = sbr.rel (%p910_p12) target bundleno = 88 (0x58), region = 36 }
  0x32   : > { %771 = dma.done.wait (%p883_p3), [#allocation5], 16  }
  0x33   : > { %773 = vsyncadd (%p883_p3), [#allocation5], 4294967280 }
  0x34   : > { %775 = dma.done.wait (%p883_p3), [#allocation7], 16  }
  0x35   : > { %777 = vsyncadd (%p883_p3), [#allocation7], 4294967280  ;;  %s967_s2 = sand.u32 1, %s796_s16  }
  0x36   : > { %s970_s0 = sshll.u32 %s967_s2, 2  ;;  %s262_s1 = scalar_lea.sflag [#allocation3], %s967_s2 }
  0x37   : > { %s265_s19 = scalar_lea.vmem [#allocation8], %s970_s0 }
  0x38   : > { %779 = dma.done.wait (%p893_p7), %s262_s1, 64  }
  0x39   : > { %781 = vsyncadd (%p893_p7), %s262_s1, 4294967232  ;;  %s272_s23 = scalar_lea.sflag [#allocation10], %s967_s2  ;;  %s275_s24 = scalar_lea.vmem [#allocation9], %s970_s0 }
  0x3a   : > { %783 = dma.done.wait (%p893_p7), %s272_s23, 64  }
  0x3b   : > { %785 = vsyncadd (%p893_p7), %s272_s23, 4294967232 }
  0x3c   : > { %281 = sfence }
  0x3d   : > { %s313_s6 = sld [smem:[#allocation2]]  ;;  %v307_v0 = vld [vmem:[%s265_s19] sm:$0x3]  ;;  %v521_v1 = vld [vmem:[%s265_s19 + $0x2] sm:$0x3]  ;;  %v336_v13 = vlaneseq  ;;  %s533_s12 = sshll.u32 %s804_s18, 2 }
  0x3e   : > { %s523_s10 = sld [smem:[#allocation2 + $0x1]]  ;;  %v310_v2 = vld [vmem:[%s275_s24] sm:$0x3]  ;;  %v522_v4 = vld [vmem:[%s275_s24 + $0x2] sm:$0x3]  ;;  %s369_s30 = scalar_lea.hbm %s1030_s4, %s533_s12 }
  0x3f   : > { %s524_s13 = sld [smem:[#allocation2 + $0x2]]  ;;  %vm338_vm0 = vcmp.lt.s32.totalorder %v336_v13, 256  ;;  %s306_s5 = scalar_lea.vmem [#allocation11], %s970_s0 }
  0x40   : > { %s525_s14 = sld [smem:[#allocation2 + $0x3]]  ;;  %s370_s18 = sshll.u32 %s306_s5, 4  ;;  %s371_s18 = int_to_ptr.vmem [resolvable:$true] %s370_s18 }
  0x41   : > { %s984_s21 = sld [smem:[#allocation6]]  ;;  %s372_s1 = sshll.u32 %s369_s30, 4  ;;  %s373_s1 = int_to_ptr.hbm [resolvable:$true] %s372_s1 }
  0x42   : > { %s526_s22 = sld [smem:[#allocation2 + $0x4]]  ;;  %s357_s19 = scalar_lea.sflag [#allocation4], %s967_s2 }
  0x43   : > { %v323_v3 = vstv %s313_s6  ;;  %s527_s7 = sld [smem:[#allocation2 + $0x5]]  ;;  %s732_s23 = sshra.s32 %s373_s1, 4  ;;  %s733_s23 = int_to_ptr.hbm [resolvable:$true] %s732_s23 }
  0x44   : > { %v324_v5 = vmul.f32 %v323_v3, %v307_v0  ;;  %v325_v6 = vstv %s523_s10  ;;  %s528_s26 = sld [smem:[#allocation2 + $0x6]]  ;;  %s734_s24 = scalar_lea.hbm %s733_s23, 4 }
  0x45   : > { %v326_v7 = vmul.f32 %v521_v1, %v325_v6  ;;  %v328_v8 = vstv %s524_s13  ;;  %s529_s8 = sld [smem:[#allocation2 + $0x7]]  ;;  %p735_p3 = scmp.ne.s32.totalorder %s733_s23, %s734_s24 }
  0x46   : > { %v329_v9 = vmul.f32 %v328_v8, %v310_v2  ;;  %v331_v10 = vstv %s525_s14  ;;  %s530_s9 = sld [smem:[#allocation6 + $0x1]]  ;;  %s738_s10 = scalar_lea.hbm %s1030_s4, 8 }
  0x47   : > { %v327_v11 = vadd.f32 %v326_v7, %v324_v5  ;;  %v332_v12 = vmul.f32 %v522_v4, %v331_v10  ;;  %v334_v18 = vstv %s984_s21  ;;  %p736_p7 = pnand %p735_p3, %p897_p8  ;;  %p739_p11 = scmp.lt.s32.totalorder %s733_s23, %s1030_s4 }
  0x48   : > { %v341_v14 = vstv %s526_s22  ;;  %p740_p12 = scmp.lt.s32.totalorder %s738_s10, %s734_s24 }
  0x49   : > { %v330_v15 = vadd.f32 %v329_v9, %v327_v11  ;;  %v342_v16 = vmul.f32 %v341_v14, %v307_v0  ;;  %v343_v17 = vstv %s527_s7  ;;  %p737_p10 = pneg %p736_p7 }
  0x4a   : > { %v344_v19 = vmul.f32 %v521_v1, %v343_v17  ;;  %v346_v20 = vstv %s528_s26  ;;  %p741_p0 = por %p740_p12, %p739_p11 }
  0x4b   : > { %v333_v21 = vadd.f32 %v332_v12, %v330_v15  ;;  %v347_v22 = vmul.f32 %v346_v20, %v310_v2  ;;  %v349_v23 = vstv %s529_s8 }
  0x4c   : > { %v345_v24 = vadd.f32 %v344_v19, %v342_v16  ;;  %v350_v25 = vmul.f32 %v522_v4, %v349_v23  ;;  %v352_v28 = vstv %s530_s9  ;;  %p742_p1 = pnand %p741_p0, %p737_p10 }
  0x4d   : > { %v335_v26 = vadd.f32 %v334_v18, %v333_v21 }
  0x4e   : > { %v348_v27 = vadd.f32 %v347_v22, %v345_v24 }
  0x4f   : > { %340 = vst.msk [vmem:[%s306_s5] sm:$0x3] %vm338_vm0, %v335_v26 }
  0x50   : > { %v351_v29 = vadd.f32 %v350_v25, %v348_v27 }
  0x52   : > { %v353_v30 = vadd.f32 %v352_v28, %v351_v29 }
  0x54   : > { %531 = vst.msk [vmem:[%s306_s5 + $0x2] sm:$0x3] %vm338_vm0, %v353_v30 }
  0x55   : > { %745 = shalt.err (!%p742_p1)
}
  0x56   : > { %s818_s2 = smov 32   ;;  %s819_s21 = smov 2  }
  0x57   : > { %548 = dma.vmem_to_hbm [thread:$0]  (%p897_p8), %s371_s18, 64, %s373_s1, %s357_s19, %s818_s2, %s818_s2, %s819_s21  }
  0x58 PF: > { %s387_s22 = sand.u32 1, %s792_s15   ;;  %p565_p2 = pnand %p510_p13, %p901_p9 }
  0x59   : > { %s388_s7 = scalar_lea.sflag [#allocation4], %s387_s22 }
  0x5a   : > { %p566_p4 = pneg %p565_p2 }
  0x5c   : > { %787 = dma.done.wait (%p566_p4), %s388_s7, 64  }
  0x5d   : > { %789 = vsyncadd (%p566_p4), %s388_s7, 4294967232  ;;  %s25_s20 = sadd.s32 1, %s812_s20   ;;  %s1048_s18 = sld [smem:[#allocation17_spill]] }
  0x5e   : > { %p22_p6 = scmp.ge.s32.totalorder %s25_s20, 4   ;;  %s1049_s19 = sld [smem:[#allocation18_spill]] }
  0x5f   : > { %s1050_s15 = smov %s796_s16  ;;  %s1051_s16 = smov %s800_s17 }
  0x60   : > { %s1052_s17 = smov %s945_s11  ;;  %24 = sbr.rel (!%p22_p6) target bundleno = 14 (0xe), region = 106 }
  0x65   :  { %394 = vsyncpa [#allocation3], 1 }
  0x66   :  { %396 = vsyncpa [#allocation3 + $0x1], 1 }
  0x67   :  { %397 = vsyncpa [#allocation10], 1 }
  0x68   :  { %399 = vsyncpa [#allocation10 + $0x1], 1 }
  0x69   :  { %400 = vsyncpa [#allocation4], 1 }
  0x6a   :  { %402 = vsyncpa [#allocation4 + $0x1], 1 }
  0x6b   :  { %403 = vsyncpa [#allocation5], 1 }
  0x6c   :  { %405 = vsyncpa [#allocation5 + $0x1], 1 }
  0x6d   :  { %406 = vsyncpa [#allocation7], 1 }

</bundles_post_ra>
